<compile_context>
chip_gen: v6e
topology: v6e:2x2x1
jax: 0.10.0
libtpu: 0.0.40
codegen_flags: <defaults>
</compile_context>

<pallas_src>
import functools

import numpy as np
import jax
import jax.numpy as jnp
from jax import lax
from jax.experimental import pallas as pl
from jax.experimental.pallas import tpu as pltpu

EPS = 1e-8        # F.cosine_similarity default eps
NEG = -1e30       # additive mask value for invalid (non-causal / cross-batch) pairs


# ----------------------------------------------------------------------------
# Pallas kernel
# ----------------------------------------------------------------------------
def reprnn_kernel(e_ref, bias_ref, wi_ref, wh_ref, bi_ref, bh_ref,
                  fcw_ref, fcb_ref, out_ref, *, seq_len, batch, hidden):
    S, B, H = seq_len, batch, hidden

    # ---- repetition features: one (S*B, S*B) Gram matmul on the MXU --------
    E = e_ref[...]                                        # (S*B, D), row f = t*B + b
    Esq = E * E
    nrm_col = jnp.sqrt(jnp.sum(Esq, axis=-1, keepdims=True))          # (S*B, 1)
    # row-norm vector obtained with a tiny ones-row matmul (no transpose needed)
    ones_d = jnp.ones((1, Esq.shape[1]), jnp.float32)
    nrm_row = jnp.sqrt(lax.dot_general(
        ones_d, Esq, (((1,), (1,)), ((), ())),
        preferred_element_type=jnp.float32))                          # (1, S*B)
    G = lax.dot_general(E, E, (((1,), (1,)), ((), ())),
                        preferred_element_type=jnp.float32)           # E @ E.T
    denom = jnp.maximum(nrm_col * nrm_row, EPS)
    cos = G / denom + bias_ref[...]                       # invalid pairs -> ~NEG
    sims = jnp.max(cos, axis=-1, keepdims=True)           # (S*B, 1) causal max-cos
    ridx = lax.broadcasted_iota(jnp.int32, (S * B, 1), 0)
    sims = jnp.where(ridx < B, 0.0, sims)                 # proc_texts[0] = zeros

    # ---- hoisted input-gate terms for ALL timesteps (single VPU pass) ------
    gx_all = sims * wi_ref[...] + bi_ref[...]             # (S*B, 3H), gates [r|z|n]

    # ---- single-layer GRU: one fused (B,H)x(H,3H) dot per serial step ------
    wh = wh_ref[...]                                      # (H, 3H)  [Whr.T|Whz.T|Whn.T]
    bh = bh_ref[...]                                      # (1, 3H)
    h = jnp.zeros((B, H), dtype=jnp.float32)
    for t in range(S):                                    # static unroll (S small)
        gx = gx_all[t * B:(t + 1) * B, :]                 # (B, 3H), contiguous rows
        gh = jnp.dot(h, wh, preferred_element_type=jnp.float32) + bh
        r = jax.nn.sigmoid(gx[:, 0:H] + gh[:, 0:H])
        z = jax.nn.sigmoid(gx[:, H:2 * H] + gh[:, H:2 * H])
        n = jnp.tanh(gx[:, 2 * H:3 * H] + r * gh[:, 2 * H:3 * H])
        h = (1.0 - z) * n + z * h

    # ---- fc1 on the final hidden state; lane-dense (1, B) output -----------
    out = lax.dot_general(fcw_ref[...], h, (((1,), (1,)), ((), ())),
                          preferred_element_type=jnp.float32)         # (1, B)
    out_ref[...] = out + fcb_ref[...]


# ----------------------------------------------------------------------------
# Wrapper (glue: embedding gather, parameter packing, mask constant)
# ----------------------------------------------------------------------------
def reprnn_forward(ends, embed_mat, raw_params):
    """ends: (seq_len, batch) int32 word ids; returns (batch,) f32 scores."""
    w_ih, w_hh, b_ih, b_hh, fc_w, fc_b = raw_params
    S, B = ends.shape
    D = embed_mat.shape[1]
    H = w_hh.shape[1]
    SB = S * B

    # embedding lookup (glue); PyTorch's (S, B) order flattens time-major so
    # the per-timestep rows are contiguous (f = t*B + b) inside the kernel.
    emb = jnp.take(embed_mat, ends.reshape(-1), axis=0).astype(jnp.float32)  # (S*B, D)

    # pre-packed GRU / fc params (PyTorch gate order r, z, n preserved)
    wi = w_ih.reshape(1, 3 * H).astype(jnp.float32)       # (1, 3H)   (input size 1)
    wh = w_hh.T.astype(jnp.float32)                       # (H, 3H):  h@wh = [h@Whr.T | h@Whz.T | h@Whn.T]
    bi = b_ih.reshape(1, 3 * H).astype(jnp.float32)
    bh = b_hh.reshape(1, 3 * H).astype(jnp.float32)
    fcw = fc_w.astype(jnp.float32)                        # (1, H)
    fcb = fc_b.reshape(1, 1).astype(jnp.float32)

    # compile-time additive mask: pair (f, g) is valid iff same batch element
    # and g's timestep is strictly earlier than f's.
    f = np.arange(SB)
    ti, b_i = f[:, None] // B, f[:, None] % B
    tj, b_j = f[None, :] // B, f[None, :] % B
    valid = (b_i == b_j) & (tj < ti)
    bias = jnp.asarray(np.where(valid, 0.0, NEG), dtype=jnp.float32)  # (SB, SB)

    kernel = functools.partial(reprnn_kernel, seq_len=S, batch=B, hidden=H)
    out = pl.pallas_call(
        kernel,
        out_shape=jax.ShapeDtypeStruct((1, B), jnp.float32),
        grid=(1,),
        in_specs=[
            pl.BlockSpec((SB, D), lambda i: (0, 0)),
            pl.BlockSpec((SB, SB), lambda i: (0, 0)),
            pl.BlockSpec((1, 3 * H), lambda i: (0, 0)),
            pl.BlockSpec((H, 3 * H), lambda i: (0, 0)),
            pl.BlockSpec((1, 3 * H), lambda i: (0, 0)),
            pl.BlockSpec((1, 3 * H), lambda i: (0, 0)),
            pl.BlockSpec((1, H), lambda i: (0, 0)),
            pl.BlockSpec((1, 1), lambda i: (0, 0)),
        ],
        out_specs=pl.BlockSpec((1, B), lambda i: (0, 0)),
        compiler_params=pltpu.CompilerParams(
            dimension_semantics=("arbitrary",)),
        # TODO(synk): for large batches, tile batch over a leading "parallel"
        # grid axis to use both TensorCores on v7x and keep the O(S^2) cosine
        # block tiled against the 64 MiB VMEM limit.
    )(emb, bias, wi, wh, bi, bh, fcw, fcb)
    return out.reshape(-1)


# ----------------------------------------------------------------------------
# Pure-JAX reference (mirrors the PyTorch forward) for a correctness check
# ----------------------------------------------------------------------------
def reprnn_reference(ends, embed_mat, raw_params):
    w_ih, w_hh, b_ih, b_hh, fc_w, fc_b = raw_params
    S, B = ends.shape
    D = embed_mat.shape[1]
    H = w_hh.shape[1]

    emb = jnp.take(embed_mat, ends.reshape(-1), axis=0).reshape(S, B, D)
    emb = emb.astype(jnp.float32)

    sims_list = [jnp.zeros((B,), jnp.float32)]
    for i in range(1, S):
        a = jnp.broadcast_to(emb[i], (i, B, D)).reshape(-1, D)
        b = emb[:i].reshape(-1, D)
        num = jnp.sum(a * b, axis=-1)
        den = jnp.maximum(jnp.linalg.norm(a, axis=-1) *
                          jnp.linalg.norm(b, axis=-1), EPS)
        s = (num / den).reshape(i, B)
        s = jnp.where(jnp.isnan(s), -1.0, s)
        sims_list.append(jnp.max(s, axis=0))
    proc = jnp.stack(sims_list)[:, :, None]               # (S, B, 1)

    Wir, Wiz, Win = w_ih[:H], w_ih[H:2 * H], w_ih[2 * H:]
    Whr, Whz, Whn = w_hh[:H], w_hh[H:2 * H], w_hh[2 * H:]
    bir, biz, bin_ = b_ih[:H], b_ih[H:2 * H], b_ih[2 * H:]
    bhr, bhz, bhn = b_hh[:H], b_hh[H:2 * H], b_hh[2 * H:]

    h = jnp.zeros((B, H), jnp.float32)
    for t in range(S):
        x = proc[t]                                       # (B, 1)
        r = jax.nn.sigmoid(x @ Wir.T + bir + h @ Whr.T + bhr)
        z = jax.nn.sigmoid(x @ Wiz.T + biz + h @ Whz.T + bhz)
        n = jnp.tanh(x @ Win.T + bin_ + r * (h @ Whn.T + bhn))
        h = (1.0 - z) * n + z * h
    return (h @ fc_w.T + fc_b).reshape(-1)


# ----------------------------------------------------------------------------
if __name__ == "__main__":
    vocab_size, embedding_dim, hidden_dim = 50, 16, 32
    seq_len, batch = 8, 2

    key = jax.random.PRNGKey(0)
    (k_emb, k_ids, k_wih, k_whh, k_bih, k_bhh, k_fcw, k_fcb) = jax.random.split(key, 8)

    # frozen embedding matrix (stands in for embed_mat in __init__)
    embed_mat = jax.random.normal(k_emb, (vocab_size, embedding_dim), jnp.float32)

    # GRU(1, hidden_dim) parameters, PyTorch-style uniform(-1/sqrt(H), 1/sqrt(H))
    bound = 1.0 / (hidden_dim ** 0.5)
    w_ih = jax.random.uniform(k_wih, (3 * hidden_dim, 1), jnp.float32, -bound, bound)
    w_hh = jax.random.uniform(k_whh, (3 * hidden_dim, hidden_dim), jnp.float32, -bound, bound)
    b_ih = jax.random.uniform(k_bih, (3 * hidden_dim,), jnp.float32, -bound, bound)
    b_hh = jax.random.uniform(k_bhh, (3 * hidden_dim,), jnp.float32, -bound, bound)
    fc_w = jax.random.uniform(k_fcw, (1, hidden_dim), jnp.float32, -bound, bound)
    fc_b = jax.random.uniform(k_fcb, (1,), jnp.float32, -bound, bound)
    raw_params = (w_ih, w_hh, b_ih, b_hh, fc_w, fc_b)

    # endings[0] in the PyTorch module: (seq_len, batch) of word ids
    ends = jax.random.randint(k_ids, (seq_len, batch), 0, vocab_size, jnp.int32)

    out = reprnn_forward(ends, embed_mat, raw_params)
    out = jax.block_until_ready(out)

    ref = reprnn_reference(ends, embed_mat, raw_params)
    if not jnp.allclose(out, ref, atol=1e-3, rtol=1e-3):
        raise AssertionError(f"mismatch: kernel={out} ref={ref}")

    print("KERNEL_OK")
</pallas_src>

<mosaic_0001>
module attributes {stable_mosaic.version = 11 : i64} {
  func.func @reprnn_kernel(%arg0: i32, %arg1: memref<16x16xf32, #tpu.memory_space<vmem>>, %arg2: memref<16x16xf32, #tpu.memory_space<vmem>>, %arg3: memref<1x96xf32, #tpu.memory_space<vmem>>, %arg4: memref<32x96xf32, #tpu.memory_space<vmem>>, %arg5: memref<1x96xf32, #tpu.memory_space<vmem>>, %arg6: memref<1x96xf32, #tpu.memory_space<vmem>>, %arg7: memref<1x32xf32, #tpu.memory_space<vmem>>, %arg8: memref<1x1xf32, #tpu.memory_space<vmem>>, %arg9: memref<1x2xf32, #tpu.memory_space<vmem>>) attributes {dimension_semantics = [#tpu.dimension_semantics<arbitrary>], iteration_bounds = array<i64: 1>, scalar_prefetch = 0 : i64, scratch_operands = 0 : i64, tpu.core_type = #tpu.core_type<tc>, window_params = [{pipeline_mode = #tpu.pipeline_mode<synchronous>, transform_indices = @transform_0, window_bounds = array<i64: 16, 16>}, {pipeline_mode = #tpu.pipeline_mode<synchronous>, transform_indices = @transform_1, window_bounds = array<i64: 16, 16>}, {pipeline_mode = #tpu.pipeline_mode<synchronous>, transform_indices = @transform_2, window_bounds = array<i64: 1, 96>}, {pipeline_mode = #tpu.pipeline_mode<synchronous>, transform_indices = @transform_3, window_bounds = array<i64: 32, 96>}, {pipeline_mode = #tpu.pipeline_mode<synchronous>, transform_indices = @transform_4, window_bounds = array<i64: 1, 96>}, {pipeline_mode = #tpu.pipeline_mode<synchronous>, transform_indices = @transform_5, window_bounds = array<i64: 1, 96>}, {pipeline_mode = #tpu.pipeline_mode<synchronous>, transform_indices = @transform_6, window_bounds = array<i64: 1, 32>}, {pipeline_mode = #tpu.pipeline_mode<synchronous>, transform_indices = @transform_7, window_bounds = array<i64: 1, 1>}, {pipeline_mode = #tpu.pipeline_mode<synchronous>, transform_indices = @transform_8, window_bounds = array<i64: 1, 2>}]} {
    %c0 = arith.constant 0 : index
    %c0_0 = arith.constant 0 : index
    %0 = vector.load %arg1[%c0, %c0_0] : memref<16x16xf32, #tpu.memory_space<vmem>>, vector<16x16xf32>
    %1 = arith.mulf %0, %0 : vector<16x16xf32>
    %cst = arith.constant dense<0.000000e+00> : vector<16xf32>
    %2 = vector.multi_reduction <add>, %1, %cst [1] : vector<16x16xf32> to vector<16xf32>
    %3 = vector.shape_cast %2 : vector<16xf32> to vector<16x1xf32>
    %4 = math.sqrt %3 : vector<16x1xf32>
    %cst_1 = arith.constant 1.000000e+00 : f32
    %5 = vector.broadcast %cst_1 : f32 to vector<1x16xf32>
    %cst_2 = arith.constant dense<0.000000e+00> : vector<1x16xf32>
    %6 = tpu.matmul %5, %1, %cst_2 {dimension_numbers = #tpu.dot_dimension_numbers<[1], [1], [0], [0], [0, 0, 1, 0], [], []>} : vector<1x16xf32>, vector<16x16xf32>, vector<1x16xf32> -> vector<1x16xf32>
    %7 = math.sqrt %6 : vector<1x16xf32>
    %cst_3 = arith.constant dense<0.000000e+00> : vector<16x16xf32>
    %8 = tpu.matmul %0, %0, %cst_3 {dimension_numbers = #tpu.dot_dimension_numbers<[1], [1], [0], [0], [0, 0, 1, 0], [], []>} : vector<16x16xf32>, vector<16x16xf32>, vector<16x16xf32> -> vector<16x16xf32>
    %9 = vector.broadcast %4 : vector<16x1xf32> to vector<16x16xf32>
    %10 = vector.broadcast %7 : vector<1x16xf32> to vector<16x16xf32>
    %11 = arith.mulf %9, %10 : vector<16x16xf32>
    %cst_4 = arith.constant 9.99999993E-9 : f32
    %12 = vector.broadcast %cst_4 : f32 to vector<16x16xf32>
    %13 = arith.maximumf %11, %12 : vector<16x16xf32>
    %14 = arith.divf %8, %13 : vector<16x16xf32>
    %c0_5 = arith.constant 0 : index
    %c0_6 = arith.constant 0 : index
    %15 = vector.load %arg2[%c0_5, %c0_6] : memref<16x16xf32, #tpu.memory_space<vmem>>, vector<16x16xf32>
    %16 = arith.addf %14, %15 : vector<16x16xf32>
    %cst_7 = arith.constant dense<0xFF800000> : vector<16xf32>
    %17 = vector.multi_reduction <maximumf>, %16, %cst_7 [1] : vector<16x16xf32> to vector<16xf32>
    %18 = vector.shape_cast %17 : vector<16xf32> to vector<16x1xf32>
    %19 = tpu.iota {dimensions = array<i32: 0>} : vector<16x1xi32>
    %c2_i32 = arith.constant 2 : i32
    %20 = vector.broadcast %c2_i32 : i32 to vector<16x1xi32>
    %21 = arith.cmpi slt, %19, %20 : vector<16x1xi32>
    %cst_8 = arith.constant 0.000000e+00 : f32
    %22 = vector.broadcast %cst_8 : f32 to vector<16x1xf32>
    %23 = arith.select %21, %22, %18 : vector<16x1xi1>, vector<16x1xf32>
    %c0_9 = arith.constant 0 : index
    %c0_10 = arith.constant 0 : index
    %24 = vector.load %arg3[%c0_9, %c0_10] : memref<1x96xf32, #tpu.memory_space<vmem>>, vector<1x96xf32>
    %25 = vector.broadcast %23 : vector<16x1xf32> to vector<16x96xf32>
    %26 = vector.broadcast %24 : vector<1x96xf32> to vector<16x96xf32>
    %27 = arith.mulf %25, %26 : vector<16x96xf32>
    %c0_11 = arith.constant 0 : index
    %c0_12 = arith.constant 0 : index
    %28 = vector.load %arg5[%c0_11, %c0_12] : memref<1x96xf32, #tpu.memory_space<vmem>>, vector<1x96xf32>
    %29 = vector.broadcast %28 : vector<1x96xf32> to vector<16x96xf32>
    %30 = arith.addf %27, %29 : vector<16x96xf32>
    %c0_13 = arith.constant 0 : index
    %c0_14 = arith.constant 0 : index
    %31 = vector.load %arg4[%c0_13, %c0_14] : memref<32x96xf32, #tpu.memory_space<vmem>>, vector<32x96xf32>
    %c0_15 = arith.constant 0 : index
    %c0_16 = arith.constant 0 : index
    %32 = vector.load %arg6[%c0_15, %c0_16] : memref<1x96xf32, #tpu.memory_space<vmem>>, vector<1x96xf32>
    %cst_17 = arith.constant 0.000000e+00 : f32
    %33 = vector.broadcast %cst_17 : f32 to vector<2x32xf32>
    %34 = vector.extract_strided_slice %30 {offsets = [0, 0], sizes = [2, 96], strides = [1, 1]} : vector<16x96xf32> to vector<2x96xf32>
    %cst_18 = arith.constant dense<0.000000e+00> : vector<2x96xf32>
    %35 = tpu.matmul %33, %31, %cst_18 {dimension_numbers = #tpu.dot_dimension_numbers<[1], [0], [0], [1], [0, 0, 1, 1], [], []>} : vector<2x32xf32>, vector<32x96xf32>, vector<2x96xf32> -> vector<2x96xf32>
    %36 = vector.broadcast %32 : vector<1x96xf32> to vector<2x96xf32>
    %37 = arith.addf %35, %36 : vector<2x96xf32>
    %38 = vector.extract_strided_slice %34 {offsets = [0, 0], sizes = [2, 32], strides = [1, 1]} : vector<2x96xf32> to vector<2x32xf32>
    %39 = vector.extract_strided_slice %37 {offsets = [0, 0], sizes = [2, 32], strides = [1, 1]} : vector<2x96xf32> to vector<2x32xf32>
    %40 = arith.addf %38, %39 : vector<2x32xf32>
    %41 = arith.negf %40 : vector<2x32xf32>
    %42 = math.exp %41 : vector<2x32xf32>
    %cst_19 = arith.constant 1.000000e+00 : f32
    %43 = vector.broadcast %cst_19 : f32 to vector<2x32xf32>
    %44 = arith.addf %43, %42 : vector<2x32xf32>
    %45 = arith.divf %43, %44 : vector<2x32xf32>
    %46 = vector.extract_strided_slice %34 {offsets = [0, 32], sizes = [2, 32], strides = [1, 1]} : vector<2x96xf32> to vector<2x32xf32>
    %47 = vector.extract_strided_slice %37 {offsets = [0, 32], sizes = [2, 32], strides = [1, 1]} : vector<2x96xf32> to vector<2x32xf32>
    %48 = arith.addf %46, %47 : vector<2x32xf32>
    %49 = arith.negf %48 : vector<2x32xf32>
    %50 = math.exp %49 : vector<2x32xf32>
    %cst_20 = arith.constant 1.000000e+00 : f32
    %51 = vector.broadcast %cst_20 : f32 to vector<2x32xf32>
    %52 = arith.addf %51, %50 : vector<2x32xf32>
    %53 = arith.divf %51, %52 : vector<2x32xf32>
    %54 = vector.extract_strided_slice %34 {offsets = [0, 64], sizes = [2, 32], strides = [1, 1]} : vector<2x96xf32> to vector<2x32xf32>
    %55 = vector.extract_strided_slice %37 {offsets = [0, 64], sizes = [2, 32], strides = [1, 1]} : vector<2x96xf32> to vector<2x32xf32>
    %56 = arith.mulf %45, %55 : vector<2x32xf32>
    %57 = arith.addf %54, %56 : vector<2x32xf32>
    %58 = math.tanh %57 : vector<2x32xf32>
    %cst_21 = arith.constant 1.000000e+00 : f32
    %59 = vector.broadcast %cst_21 : f32 to vector<2x32xf32>
    %60 = arith.subf %59, %53 : vector<2x32xf32>
    %61 = arith.mulf %60, %58 : vector<2x32xf32>
    %62 = arith.mulf %53, %33 : vector<2x32xf32>
    %63 = arith.addf %61, %62 : vector<2x32xf32>
    %64 = vector.extract_strided_slice %30 {offsets = [2, 0], sizes = [2, 96], strides = [1, 1]} : vector<16x96xf32> to vector<2x96xf32>
    %cst_22 = arith.constant dense<0.000000e+00> : vector<2x96xf32>
    %65 = tpu.matmul %63, %31, %cst_22 {dimension_numbers = #tpu.dot_dimension_numbers<[1], [0], [0], [1], [0, 0, 1, 1], [], []>} : vector<2x32xf32>, vector<32x96xf32>, vector<2x96xf32> -> vector<2x96xf32>
    %66 = vector.broadcast %32 : vector<1x96xf32> to vector<2x96xf32>
    %67 = arith.addf %65, %66 : vector<2x96xf32>
    %68 = vector.extract_strided_slice %64 {offsets = [0, 0], sizes = [2, 32], strides = [1, 1]} : vector<2x96xf32> to vector<2x32xf32>
    %69 = vector.extract_strided_slice %67 {offsets = [0, 0], sizes = [2, 32], strides = [1, 1]} : vector<2x96xf32> to vector<2x32xf32>
    %70 = arith.addf %68, %69 : vector<2x32xf32>
    %71 = arith.negf %70 : vector<2x32xf32>
    %72 = math.exp %71 : vector<2x32xf32>
    %cst_23 = arith.constant 1.000000e+00 : f32
    %73 = vector.broadcast %cst_23 : f32 to vector<2x32xf32>
    %74 = arith.addf %73, %72 : vector<2x32xf32>
    %75 = arith.divf %73, %74 : vector<2x32xf32>
    %76 = vector.extract_strided_slice %64 {offsets = [0, 32], sizes = [2, 32], strides = [1, 1]} : vector<2x96xf32> to vector<2x32xf32>
    %77 = vector.extract_strided_slice %67 {offsets = [0, 32], sizes = [2, 32], strides = [1, 1]} : vector<2x96xf32> to vector<2x32xf32>
    %78 = arith.addf %76, %77 : vector<2x32xf32>
    %79 = arith.negf %78 : vector<2x32xf32>
    %80 = math.exp %79 : vector<2x32xf32>
    %cst_24 = arith.constant 1.000000e+00 : f32
    %81 = vector.broadcast %cst_24 : f32 to vector<2x32xf32>
    %82 = arith.addf %81, %80 : vector<2x32xf32>
    %83 = arith.divf %81, %82 : vector<2x32xf32>
    %84 = vector.extract_strided_slice %64 {offsets = [0, 64], sizes = [2, 32], strides = [1, 1]} : vector<2x96xf32> to vector<2x32xf32>
    %85 = vector.extract_strided_slice %67 {offsets = [0, 64], sizes = [2, 32], strides = [1, 1]} : vector<2x96xf32> to vector<2x32xf32>
    %86 = arith.mulf %75, %85 : vector<2x32xf32>
    %87 = arith.addf %84, %86 : vector<2x32xf32>
    %88 = math.tanh %87 : vector<2x32xf32>
    %cst_25 = arith.constant 1.000000e+00 : f32
    %89 = vector.broadcast %cst_25 : f32 to vector<2x32xf32>
    %90 = arith.subf %89, %83 : vector<2x32xf32>
    %91 = arith.mulf %90, %88 : vector<2x32xf32>
    %92 = arith.mulf %83, %63 : vector<2x32xf32>
    %93 = arith.addf %91, %92 : vector<2x32xf32>
    %94 = vector.extract_strided_slice %30 {offsets = [4, 0], sizes = [2, 96], strides = [1, 1]} : vector<16x96xf32> to vector<2x96xf32>
    %cst_26 = arith.constant dense<0.000000e+00> : vector<2x96xf32>
    %95 = tpu.matmul %93, %31, %cst_26 {dimension_numbers = #tpu.dot_dimension_numbers<[1], [0], [0], [1], [0, 0, 1, 1], [], []>} : vector<2x32xf32>, vector<32x96xf32>, vector<2x96xf32> -> vector<2x96xf32>
    %96 = vector.broadcast %32 : vector<1x96xf32> to vector<2x96xf32>
    %97 = arith.addf %95, %96 : vector<2x96xf32>
    %98 = vector.extract_strided_slice %94 {offsets = [0, 0], sizes = [2, 32], strides = [1, 1]} : vector<2x96xf32> to vector<2x32xf32>
    %99 = vector.extract_strided_slice %97 {offsets = [0, 0], sizes = [2, 32], strides = [1, 1]} : vector<2x96xf32> to vector<2x32xf32>
    %100 = arith.addf %98, %99 : vector<2x32xf32>
    %101 = arith.negf %100 : vector<2x32xf32>
    %102 = math.exp %101 : vector<2x32xf32>
    %cst_27 = arith.constant 1.000000e+00 : f32
    %103 = vector.broadcast %cst_27 : f32 to vector<2x32xf32>
    %104 = arith.addf %103, %102 : vector<2x32xf32>
    %105 = arith.divf %103, %104 : vector<2x32xf32>
    %106 = vector.extract_strided_slice %94 {offsets = [0, 32], sizes = [2, 32], strides = [1, 1]} : vector<2x96xf32> to vector<2x32xf32>
    %107 = vector.extract_strided_slice %97 {offsets = [0, 32], sizes = [2, 32], strides = [1, 1]} : vector<2x96xf32> to vector<2x32xf32>
    %108 = arith.addf %106, %107 : vector<2x32xf32>
    %109 = arith.negf %108 : vector<2x32xf32>
    %110 = math.exp %109 : vector<2x32xf32>
    %cst_28 = arith.constant 1.000000e+00 : f32
    %111 = vector.broadcast %cst_28 : f32 to vector<2x32xf32>
    %112 = arith.addf %111, %110 : vector<2x32xf32>
    %113 = arith.divf %111, %112 : vector<2x32xf32>
    %114 = vector.extract_strided_slice %94 {offsets = [0, 64], sizes = [2, 32], strides = [1, 1]} : vector<2x96xf32> to vector<2x32xf32>
    %115 = vector.extract_strided_slice %97 {offsets = [0, 64], sizes = [2, 32], strides = [1, 1]} : vector<2x96xf32> to vector<2x32xf32>
    %116 = arith.mulf %105, %115 : vector<2x32xf32>
    %117 = arith.addf %114, %116 : vector<2x32xf32>
    %118 = math.tanh %117 : vector<2x32xf32>
    %cst_29 = arith.constant 1.000000e+00 : f32
    %119 = vector.broadcast %cst_29 : f32 to vector<2x32xf32>
    %120 = arith.subf %119, %113 : vector<2x32xf32>
    %121 = arith.mulf %120, %118 : vector<2x32xf32>
    %122 = arith.mulf %113, %93 : vector<2x32xf32>
    %123 = arith.addf %121, %122 : vector<2x32xf32>
    %124 = vector.extract_strided_slice %30 {offsets = [6, 0], sizes = [2, 96], strides = [1, 1]} : vector<16x96xf32> to vector<2x96xf32>
    %cst_30 = arith.constant dense<0.000000e+00> : vector<2x96xf32>
    %125 = tpu.matmul %123, %31, %cst_30 {dimension_numbers = #tpu.dot_dimension_numbers<[1], [0], [0], [1], [0, 0, 1, 1], [], []>} : vector<2x32xf32>, vector<32x96xf32>, vector<2x96xf32> -> vector<2x96xf32>
    %126 = vector.broadcast %32 : vector<1x96xf32> to vector<2x96xf32>
    %127 = arith.addf %125, %126 : vector<2x96xf32>
    %128 = vector.extract_strided_slice %124 {offsets = [0, 0], sizes = [2, 32], strides = [1, 1]} : vector<2x96xf32> to vector<2x32xf32>
    %129 = vector.extract_strided_slice %127 {offsets = [0, 0], sizes = [2, 32], strides = [1, 1]} : vector<2x96xf32> to vector<2x32xf32>
    %130 = arith.addf %128, %129 : vector<2x32xf32>
    %131 = arith.negf %130 : vector<2x32xf32>
    %132 = math.exp %131 : vector<2x32xf32>
    %cst_31 = arith.constant 1.000000e+00 : f32
    %133 = vector.broadcast %cst_31 : f32 to vector<2x32xf32>
    %134 = arith.addf %133, %132 : vector<2x32xf32>
    %135 = arith.divf %133, %134 : vector<2x32xf32>
    %136 = vector.extract_strided_slice %124 {offsets = [0, 32], sizes = [2, 32], strides = [1, 1]} : vector<2x96xf32> to vector<2x32xf32>
    %137 = vector.extract_strided_slice %127 {offsets = [0, 32], sizes = [2, 32], strides = [1, 1]} : vector<2x96xf32> to vector<2x32xf32>
    %138 = arith.addf %136, %137 : vector<2x32xf32>
    %139 = arith.negf %138 : vector<2x32xf32>
    %140 = math.exp %139 : vector<2x32xf32>
    %cst_32 = arith.constant 1.000000e+00 : f32
    %141 = vector.broadcast %cst_32 : f32 to vector<2x32xf32>
    %142 = arith.addf %141, %140 : vector<2x32xf32>
    %143 = arith.divf %141, %142 : vector<2x32xf32>
    %144 = vector.extract_strided_slice %124 {offsets = [0, 64], sizes = [2, 32], strides = [1, 1]} : vector<2x96xf32> to vector<2x32xf32>
    %145 = vector.extract_strided_slice %127 {offsets = [0, 64], sizes = [2, 32], strides = [1, 1]} : vector<2x96xf32> to vector<2x32xf32>
    %146 = arith.mulf %135, %145 : vector<2x32xf32>
    %147 = arith.addf %144, %146 : vector<2x32xf32>
    %148 = math.tanh %147 : vector<2x32xf32>
    %cst_33 = arith.constant 1.000000e+00 : f32
    %149 = vector.broadcast %cst_33 : f32 to vector<2x32xf32>
    %150 = arith.subf %149, %143 : vector<2x32xf32>
    %151 = arith.mulf %150, %148 : vector<2x32xf32>
    %152 = arith.mulf %143, %123 : vector<2x32xf32>
    %153 = arith.addf %151, %152 : vector<2x32xf32>
    %154 = vector.extract_strided_slice %30 {offsets = [8, 0], sizes = [2, 96], strides = [1, 1]} : vector<16x96xf32> to vector<2x96xf32>
    %cst_34 = arith.constant dense<0.000000e+00> : vector<2x96xf32>
    %155 = tpu.matmul %153, %31, %cst_34 {dimension_numbers = #tpu.dot_dimension_numbers<[1], [0], [0], [1], [0, 0, 1, 1], [], []>} : vector<2x32xf32>, vector<32x96xf32>, vector<2x96xf32> -> vector<2x96xf32>
    %156 = vector.broadcast %32 : vector<1x96xf32> to vector<2x96xf32>
    %157 = arith.addf %155, %156 : vector<2x96xf32>
    %158 = vector.extract_strided_slice %154 {offsets = [0, 0], sizes = [2, 32], strides = [1, 1]} : vector<2x96xf32> to vector<2x32xf32>
    %159 = vector.extract_strided_slice %157 {offsets = [0, 0], sizes = [2, 32], strides = [1, 1]} : vector<2x96xf32> to vector<2x32xf32>
    %160 = arith.addf %158, %159 : vector<2x32xf32>
    %161 = arith.negf %160 : vector<2x32xf32>
    %162 = math.exp %161 : vector<2x32xf32>
    %cst_35 = arith.constant 1.000000e+00 : f32
    %163 = vector.broadcast %cst_35 : f32 to vector<2x32xf32>
    %164 = arith.addf %163, %162 : vector<2x32xf32>
    %165 = arith.divf %163, %164 : vector<2x32xf32>
    %166 = vector.extract_strided_slice %154 {offsets = [0, 32], sizes = [2, 32], strides = [1, 1]} : vector<2x96xf32> to vector<2x32xf32>
    %167 = vector.extract_strided_slice %157 {offsets = [0, 32], sizes = [2, 32], strides = [1, 1]} : vector<2x96xf32> to vector<2x32xf32>
    %168 = arith.addf %166, %167 : vector<2x32xf32>
    %169 = arith.negf %168 : vector<2x32xf32>
    %170 = math.exp %169 : vector<2x32xf32>
    %cst_36 = arith.constant 1.000000e+00 : f32
    %171 = vector.broadcast %cst_36 : f32 to vector<2x32xf32>
    %172 = arith.addf %171, %170 : vector<2x32xf32>
    %173 = arith.divf %171, %172 : vector<2x32xf32>
    %174 = vector.extract_strided_slice %154 {offsets = [0, 64], sizes = [2, 32], strides = [1, 1]} : vector<2x96xf32> to vector<2x32xf32>
    %175 = vector.extract_strided_slice %157 {offsets = [0, 64], sizes = [2, 32], strides = [1, 1]} : vector<2x96xf32> to vector<2x32xf32>
    %176 = arith.mulf %165, %175 : vector<2x32xf32>
    %177 = arith.addf %174, %176 : vector<2x32xf32>
    %178 = math.tanh %177 : vector<2x32xf32>
    %cst_37 = arith.constant 1.000000e+00 : f32
    %179 = vector.broadcast %cst_37 : f32 to vector<2x32xf32>
    %180 = arith.subf %179, %173 : vector<2x32xf32>
    %181 = arith.mulf %180, %178 : vector<2x32xf32>
    %182 = arith.mulf %173, %153 : vector<2x32xf32>
    %183 = arith.addf %181, %182 : vector<2x32xf32>
    %184 = vector.extract_strided_slice %30 {offsets = [10, 0], sizes = [2, 96], strides = [1, 1]} : vector<16x96xf32> to vector<2x96xf32>
    %cst_38 = arith.constant dense<0.000000e+00> : vector<2x96xf32>
    %185 = tpu.matmul %183, %31, %cst_38 {dimension_numbers = #tpu.dot_dimension_numbers<[1], [0], [0], [1], [0, 0, 1, 1], [], []>} : vector<2x32xf32>, vector<32x96xf32>, vector<2x96xf32> -> vector<2x96xf32>
    %186 = vector.broadcast %32 : vector<1x96xf32> to vector<2x96xf32>
    %187 = arith.addf %185, %186 : vector<2x96xf32>
    %188 = vector.extract_strided_slice %184 {offsets = [0, 0], sizes = [2, 32], strides = [1, 1]} : vector<2x96xf32> to vector<2x32xf32>
    %189 = vector.extract_strided_slice %187 {offsets = [0, 0], sizes = [2, 32], strides = [1, 1]} : vector<2x96xf32> to vector<2x32xf32>
    %190 = arith.addf %188, %189 : vector<2x32xf32>
    %191 = arith.negf %190 : vector<2x32xf32>
    %192 = math.exp %191 : vector<2x32xf32>
    %cst_39 = arith.constant 1.000000e+00 : f32
    %193 = vector.broadcast %cst_39 : f32 to vector<2x32xf32>
    %194 = arith.addf %193, %192 : vector<2x32xf32>
    %195 = arith.divf %193, %194 : vector<2x32xf32>
    %196 = vector.extract_strided_slice %184 {offsets = [0, 32], sizes = [2, 32], strides = [1, 1]} : vector<2x96xf32> to vector<2x32xf32>
    %197 = vector.extract_strided_slice %187 {offsets = [0, 32], sizes = [2, 32], strides = [1, 1]} : vector<2x96xf32> to vector<2x32xf32>
    %198 = arith.addf %196, %197 : vector<2x32xf32>
    %199 = arith.negf %198 : vector<2x32xf32>
    %200 = math.exp %199 : vector<2x32xf32>
    %cst_40 = arith.constant 1.000000e+00 : f32
    %201 = vector.broadcast %cst_40 : f32 to vector<2x32xf32>
    %202 = arith.addf %201, %200 : vector<2x32xf32>
    %203 = arith.divf %201, %202 : vector<2x32xf32>
    %204 = vector.extract_strided_slice %184 {offsets = [0, 64], sizes = [2, 32], strides = [1, 1]} : vector<2x96xf32> to vector<2x32xf32>
    %205 = vector.extract_strided_slice %187 {offsets = [0, 64], sizes = [2, 32], strides = [1, 1]} : vector<2x96xf32> to vector<2x32xf32>
    %206 = arith.mulf %195, %205 : vector<2x32xf32>
    %207 = arith.addf %204, %206 : vector<2x32xf32>
    %208 = math.tanh %207 : vector<2x32xf32>
    %cst_41 = arith.constant 1.000000e+00 : f32
    %209 = vector.broadcast %cst_41 : f32 to vector<2x32xf32>
    %210 = arith.subf %209, %203 : vector<2x32xf32>
    %211 = arith.mulf %210, %208 : vector<2x32xf32>
    %212 = arith.mulf %203, %183 : vector<2x32xf32>
    %213 = arith.addf %211, %212 : vector<2x32xf32>
    %214 = vector.extract_strided_slice %30 {offsets = [12, 0], sizes = [2, 96], strides = [1, 1]} : vector<16x96xf32> to vector<2x96xf32>
    %cst_42 = arith.constant dense<0.000000e+00> : vector<2x96xf32>
    %215 = tpu.matmul %213, %31, %cst_42 {dimension_numbers = #tpu.dot_dimension_numbers<[1], [0], [0], [1], [0, 0, 1, 1], [], []>} : vector<2x32xf32>, vector<32x96xf32>, vector<2x96xf32> -> vector<2x96xf32>
    %216 = vector.broadcast %32 : vector<1x96xf32> to vector<2x96xf32>
    %217 = arith.addf %215, %216 : vector<2x96xf32>
    %218 = vector.extract_strided_slice %214 {offsets = [0, 0], sizes = [2, 32], strides = [1, 1]} : vector<2x96xf32> to vector<2x32xf32>
    %219 = vector.extract_strided_slice %217 {offsets = [0, 0], sizes = [2, 32], strides = [1, 1]} : vector<2x96xf32> to vector<2x32xf32>
    %220 = arith.addf %218, %219 : vector<2x32xf32>
    %221 = arith.negf %220 : vector<2x32xf32>
    %222 = math.exp %221 : vector<2x32xf32>
    %cst_43 = arith.constant 1.000000e+00 : f32
    %223 = vector.broadcast %cst_43 : f32 to vector<2x32xf32>
    %224 = arith.addf %223, %222 : vector<2x32xf32>
    %225 = arith.divf %223, %224 : vector<2x32xf32>
    %226 = vector.extract_strided_slice %214 {offsets = [0, 32], sizes = [2, 32], strides = [1, 1]} : vector<2x96xf32> to vector<2x32xf32>
    %227 = vector.extract_strided_slice %217 {offsets = [0, 32], sizes = [2, 32], strides = [1, 1]} : vector<2x96xf32> to vector<2x32xf32>
    %228 = arith.addf %226, %227 : vector<2x32xf32>
    %229 = arith.negf %228 : vector<2x32xf32>
    %230 = math.exp %229 : vector<2x32xf32>
    %cst_44 = arith.constant 1.000000e+00 : f32
    %231 = vector.broadcast %cst_44 : f32 to vector<2x32xf32>
    %232 = arith.addf %231, %230 : vector<2x32xf32>
    %233 = arith.divf %231, %232 : vector<2x32xf32>
    %234 = vector.extract_strided_slice %214 {offsets = [0, 64], sizes = [2, 32], strides = [1, 1]} : vector<2x96xf32> to vector<2x32xf32>
    %235 = vector.extract_strided_slice %217 {offsets = [0, 64], sizes = [2, 32], strides = [1, 1]} : vector<2x96xf32> to vector<2x32xf32>
    %236 = arith.mulf %225, %235 : vector<2x32xf32>
    %237 = arith.addf %234, %236 : vector<2x32xf32>
    %238 = math.tanh %237 : vector<2x32xf32>
    %cst_45 = arith.constant 1.000000e+00 : f32
    %239 = vector.broadcast %cst_45 : f32 to vector<2x32xf32>
    %240 = arith.subf %239, %233 : vector<2x32xf32>
    %241 = arith.mulf %240, %238 : vector<2x32xf32>
    %242 = arith.mulf %233, %213 : vector<2x32xf32>
    %243 = arith.addf %241, %242 : vector<2x32xf32>
    %244 = vector.extract_strided_slice %30 {offsets = [14, 0], sizes = [2, 96], strides = [1, 1]} : vector<16x96xf32> to vector<2x96xf32>
    %cst_46 = arith.constant dense<0.000000e+00> : vector<2x96xf32>
    %245 = tpu.matmul %243, %31, %cst_46 {dimension_numbers = #tpu.dot_dimension_numbers<[1], [0], [0], [1], [0, 0, 1, 1], [], []>} : vector<2x32xf32>, vector<32x96xf32>, vector<2x96xf32> -> vector<2x96xf32>
    %246 = vector.broadcast %32 : vector<1x96xf32> to vector<2x96xf32>
    %247 = arith.addf %245, %246 : vector<2x96xf32>
    %248 = vector.extract_strided_slice %244 {offsets = [0, 0], sizes = [2, 32], strides = [1, 1]} : vector<2x96xf32> to vector<2x32xf32>
    %249 = vector.extract_strided_slice %247 {offsets = [0, 0], sizes = [2, 32], strides = [1, 1]} : vector<2x96xf32> to vector<2x32xf32>
    %250 = arith.addf %248, %249 : vector<2x32xf32>
    %251 = arith.negf %250 : vector<2x32xf32>
    %252 = math.exp %251 : vector<2x32xf32>
    %cst_47 = arith.constant 1.000000e+00 : f32
    %253 = vector.broadcast %cst_47 : f32 to vector<2x32xf32>
    %254 = arith.addf %253, %252 : vector<2x32xf32>
    %255 = arith.divf %253, %254 : vector<2x32xf32>
    %256 = vector.extract_strided_slice %244 {offsets = [0, 32], sizes = [2, 32], strides = [1, 1]} : vector<2x96xf32> to vector<2x32xf32>
    %257 = vector.extract_strided_slice %247 {offsets = [0, 32], sizes = [2, 32], strides = [1, 1]} : vector<2x96xf32> to vector<2x32xf32>
    %258 = arith.addf %256, %257 : vector<2x32xf32>
    %259 = arith.negf %258 : vector<2x32xf32>
    %260 = math.exp %259 : vector<2x32xf32>
    %cst_48 = arith.constant 1.000000e+00 : f32
    %261 = vector.broadcast %cst_48 : f32 to vector<2x32xf32>
    %262 = arith.addf %261, %260 : vector<2x32xf32>
    %263 = arith.divf %261, %262 : vector<2x32xf32>
    %264 = vector.extract_strided_slice %244 {offsets = [0, 64], sizes = [2, 32], strides = [1, 1]} : vector<2x96xf32> to vector<2x32xf32>
    %265 = vector.extract_strided_slice %247 {offsets = [0, 64], sizes = [2, 32], strides = [1, 1]} : vector<2x96xf32> to vector<2x32xf32>
    %266 = arith.mulf %255, %265 : vector<2x32xf32>
    %267 = arith.addf %264, %266 : vector<2x32xf32>
    %268 = math.tanh %267 : vector<2x32xf32>
    %cst_49 = arith.constant 1.000000e+00 : f32
    %269 = vector.broadcast %cst_49 : f32 to vector<2x32xf32>
    %270 = arith.subf %269, %263 : vector<2x32xf32>
    %271 = arith.mulf %270, %268 : vector<2x32xf32>
    %272 = arith.mulf %263, %243 : vector<2x32xf32>
    %273 = arith.addf %271, %272 : vector<2x32xf32>
    %c0_50 = arith.constant 0 : index
    %c0_51 = arith.constant 0 : index
    %274 = vector.load %arg7[%c0_50, %c0_51] : memref<1x32xf32, #tpu.memory_space<vmem>>, vector<1x32xf32>
    %cst_52 = arith.constant dense<0.000000e+00> : vector<1x2xf32>
    %275 = tpu.matmul %274, %273, %cst_52 {dimension_numbers = #tpu.dot_dimension_numbers<[1], [1], [0], [0], [0, 0, 1, 0], [], []>} : vector<1x32xf32>, vector<2x32xf32>, vector<1x2xf32> -> vector<1x2xf32>
    %c0_53 = arith.constant 0 : index
    %c0_54 = arith.constant 0 : index
    %276 = vector.load %arg8[%c0_53, %c0_54] : memref<1x1xf32, #tpu.memory_space<vmem>>, vector<1x1xf32>
    %277 = vector.broadcast %276 : vector<1x1xf32> to vector<1x2xf32>
    %278 = arith.addf %275, %277 : vector<1x2xf32>
    %c0_55 = arith.constant 0 : index
    %c0_56 = arith.constant 0 : index
    %279 = vector.load %arg9[%c0_55, %c0_56] : memref<1x2xf32, #tpu.memory_space<vmem>>, vector<1x2xf32>
    tpu.vector_store %arg9[%c0_55, %c0_56], %278 {strides = array<i32>} : memref<1x2xf32, #tpu.memory_space<vmem>>, vector<1x2xf32>,
    return
  }
  func.func @transform_0(%arg0: i32) -> (i32, i32) {
    %c0_i32 = arith.constant 0 : i32
    %c0_i32_0 = arith.constant 0 : i32
    %c0_i32_1 = arith.constant 0 : i32
    return %c0_i32, %c0_i32_0 : i32, i32
  }
  func.func @transform_1(%arg0: i32) -> (i32, i32) {
    %c0_i32 = arith.constant 0 : i32
    %c0_i32_0 = arith.constant 0 : i32
    %c0_i32_1 = arith.constant 0 : i32
    return %c0_i32, %c0_i32_0 : i32, i32
  }
  func.func @transform_2(%arg0: i32) -> (i32, i32) {
    %c0_i32 = arith.constant 0 : i32
    %c0_i32_0 = arith.constant 0 : i32
    %c0_i32_1 = arith.constant 0 : i32
    return %c0_i32, %c0_i32_0 : i32, i32
  }
  func.func @transform_3(%arg0: i32) -> (i32, i32) {
    %c0_i32 = arith.constant 0 : i32
    %c0_i32_0 = arith.constant 0 : i32
    %c0_i32_1 = arith.constant 0 : i32
    return %c0_i32, %c0_i32_0 : i32, i32
  }
  func.func @transform_4(%arg0: i32) -> (i32, i32) {
    %c0_i32 = arith.constant 0 : i32
    %c0_i32_0 = arith.constant 0 : i32
    %c0_i32_1 = arith.constant 0 : i32
    return %c0_i32, %c0_i32_0 : i32, i32
  }
  func.func @transform_5(%arg0: i32) -> (i32, i32) {
    %c0_i32 = arith.constant 0 : i32
    %c0_i32_0 = arith.constant 0 : i32
    %c0_i32_1 = arith.constant 0 : i32
    return %c0_i32, %c0_i32_0 : i32, i32
  }
  func.func @transform_6(%arg0: i32) -> (i32, i32) {
    %c0_i32 = arith.constant 0 : i32
    %c0_i32_0 = arith.constant 0 : i32
    %c0_i32_1 = arith.constant 0 : i32
    return %c0_i32, %c0_i32_0 : i32, i32
  }
  func.func @transform_7(%arg0: i32) -> (i32, i32) {
    %c0_i32 = arith.constant 0 : i32
    %c0_i32_0 = arith.constant 0 : i32
    %c0_i32_1 = arith.constant 0 : i32
    return %c0_i32, %c0_i32_0 : i32, i32
  }
  func.func @transform_8(%arg0: i32) -> (i32, i32) {
    %c0_i32 = arith.constant 0 : i32
    %c0_i32_0 = arith.constant 0 : i32
    %c0_i32_1 = arith.constant 0 : i32
    return %c0_i32, %c0_i32_0 : i32, i32
  }
}

</mosaic_0001>

<bundles_post_ra>
// kernel: tpu_custom_call.1
= control target key start
LH: loop header
LB: loop body
LE: loop exit
PB: predicated region body
PF: predicated region fallthrough
CT: control target
= control target key end

     0   :  { %s1900_s0 = inlined_call_operand.hbm [shape: f32[16,16], index: 0, kind: input, shape index: {}]   ;;  %s1901_s1 = inlined_call_operand.hbm [shape: f32[16,16], index: 1, kind: input, shape index: {}]   ;;  %s1902_s2 = inlined_call_operand.vmem [shape: f32[1,96], index: 2, kind: input, shape index: {}]   ;;  %s1903_s3 = inlined_call_operand.hbm [shape: f32[32,96], index: 3, kind: input, shape index: {}]   ;;  %s1904_s4 = inlined_call_operand.vmem [shape: f32[1,96], index: 4, kind: input, shape index: {}]   ;;  %s1905_s5 = inlined_call_operand.vmem [shape: f32[1,96], index: 5, kind: input, shape index: {}]   ;;  %s1906_s6 = inlined_call_operand.vmem [shape: f32[1,32], index: 6, kind: input, shape index: {}]   ;;  %s1907_s7 = inlined_call_operand.<no memory space> [shape: f32[1,1], index: 7, kind: input, shape index: {}]   ;;  %s1908_s8 = inlined_call_operand.hbm [shape: f32[1,2], index: 8, kind: output, shape index: {}]  }
   0x1   :  { %v13_v0 = vstv %s1907_s7 }
   0x2   :  { %14 = vst [vmem:[#allocation2] sm:$0x1] %v13_v0 }
   0x3   :  { %15 = vsyncpa [#allocation4], 0 }
   0x4   :  { %16 = vsyncpa [#allocation7], 0 }
   0x5   :  { %17 = vsyncpa [#allocation5], 0  ;;  %s1609_s29 = smov [#allocation6]   ;;  %s1610_s9 = smov [#allocation3]  }
   0x6   :  { %s35_s30 = sshll.u32 %s1609_s29, 4  ;;  %s23_s10 = sshll.u32 %s1610_s9, 4  ;;  %s36_s30 = int_to_ptr.vmem [resolvable:$true] %s35_s30  ;;  %s24_s10 = int_to_ptr.vmem [resolvable:$true] %s23_s10 }
   0x7   :  { %s1531_s11 = scalar_lea.vmem %s36_s30, 256  ;;  %p1536_p1 = scmp.lt.s32.totalorder %s36_s30, %s36_s30 }
   0x8   :  { %p1532_p0 = scmp.ne.s32.totalorder %s36_s30, %s1531_s11  ;;  %p1537_p2 = scmp.lt.s32.totalorder %s1531_s11, %s1531_s11 }
   0xa   :  { %p1538_p3 = por %p1537_p2, %p1536_p1 }
   0xc   :  { %p1539_p4 = pnand %p1538_p3, %p1532_p0 }
   0xe   :  { %1542 = shalt.err (!%p1539_p4)
}
   0xf   :  { %s1611_s12 = smov 128   ;;  %s1612_s13 = smov 8  }
  0x10   :  { %41 = dma.hbm_to_vmem [thread:$0]  %s1901_s1, 256, %s36_s30, [#allocation7], %s1611_s12, %s1611_s12, %s1612_s13  }
  0x11   :  { %s1551_s15 = scalar_lea.vmem %s24_s10, 256  ;;  %p1556_p6 = scmp.lt.s32.totalorder %s24_s10, %s24_s10 }
  0x12   :  { %p1552_p5 = scmp.ne.s32.totalorder %s24_s10, %s1551_s15  ;;  %p1557_p7 = scmp.lt.s32.totalorder %s1551_s15, %s1551_s15 }
  0x14   :  { %p1558_p8 = por %p1557_p7, %p1556_p6 }
  0x16   :  { %p1559_p9 = pnand %p1558_p8, %p1552_p5 }
  0x18   :  { %1562 = shalt.err (!%p1559_p9)
}
  0x19   :  { %29 = dma.hbm_to_vmem [thread:$0]  %s1900_s0, 256, %s24_s10, [#allocation4], %s1611_s12, %s1611_s12, %s1612_s13  }
  0x1a   :  { %s1613_s18 = smov [#allocation8]  }
  0x1b   :  { %s49_s19 = sshll.u32 %s1613_s18, 4  ;;  %s50_s19 = int_to_ptr.vmem [resolvable:$true] %s49_s19 }
  0x1c   :  { %s1571_s20 = scalar_lea.vmem %s50_s19, 512  ;;  %p1576_p11 = scmp.lt.s32.totalorder %s50_s19, %s50_s19 }
  0x1d   :  { %p1572_p10 = scmp.ne.s32.totalorder %s50_s19, %s1571_s20  ;;  %p1577_p12 = scmp.lt.s32.totalorder %s1571_s20, %s1571_s20 }
  0x1f   :  { %p1578_p13 = por %p1577_p12, %p1576_p11 }
  0x21   :  { %p1579_p0 = pnand %p1578_p13, %p1572_p10 }
  0x23   :  { %1582 = shalt.err (!%p1579_p0)
}
  0x24   :  { %55 = dma.hbm_to_vmem [thread:$0]  %s1903_s3, 512, %s50_s19, [#allocation7], %s1611_s12, %s1611_s12, %s1612_s13  }
  0x25   :  { %1603 = dma.done.wait [#allocation4], 256  }
  0x26   :  { %1604 = vsyncadd [#allocation4], 4294967040 }
  0x27   :  { %1605 = dma.done.wait [#allocation7], 768  }
  0x28   :  { %1606 = vsyncadd [#allocation7], 4294966528  ;;  %v1614_v1 = vmov 0.0   ;;  %vm1615_vm0 = vmmov 0   ;;  %v74_v2 = vld [vmem:[#allocation3 + $0x8] sm:$0xff]  ;;  %vm77_vm1 = vcmask 130048   ;;  %v265_v16 = vlaneseq }
  0x29   :  { %1344 = vmatprep.subr.mxu0 %v1614_v1  ;;  %1348 = vmatprep.mubr.msk.f32.mxu0 %vm1615_vm0, %v1614_v1  ;;  %v73_v3 = vld [vmem:[#allocation3] sm:$0xff]  ;;  %v1681_v4 = vmul.f32 %v74_v2, %v74_v2  ;;  %v1695_v7 = vld [vmem:[#allocation8 + $0x18] sm:$0xff]  ;;  %v1616_v8 = vmov 1.0   ;;  %v1699_v9 = vld [vmem:[#allocation8 + $0x10] sm:$0xff]  ;;  %s1617_s22 = smov 64   ;;  %vm323_vm7 = vcmask 261120  }
  0x2a   :  { %v75_v5 = vmul.f32 %v73_v3, %v73_v3  ;;  %1351 = vmatprep.subr.msk.mxu1 %vm77_vm1, %v74_v2  ;;  %1355 = vmatprep.mubr.msk.f32.mxu1 %vm77_vm1, %v73_v3  ;;  %v1706_v10 = vld [vmem:[#allocation8 + $0x8] sm:$0xff]  ;;  %v1712_v11 = vld [vmem:[#allocation8] sm:$0xff]  ;;  %v1739_v15 = vld [vmem:[%s1905_s5] ss:$0 sm:$0xff]  ;;  %v1742_v21 = vshrl.u32 %v265_v16, 7  ;;  %s1620_s27 = smov [#allocation9]  }
  0x2b   :  { %1352 = vmatpush3.xpose.msk.msra.mxu1 %vm77_vm1, %v74_v2  ;;  %1345 = vmatpush3.xpose.msk.msra.mxu0 %vm77_vm1, %v1681_v4  ;;  %v277_v38 = vld [vmem:[#allocation6] sm:$0xff]  ;;  %v1758_v42 = vld [vmem:[%s1902_s2] ss:$0 sm:$0xff]  ;;  %s1618_s2 = smov 96   ;;  %s1258_s28 = sshll.u32 %s1620_s27, 4  ;;  %vm1250_vm10 = vcmask 8192   ;;  %s1259_s28 = int_to_ptr.vmem [resolvable:$true] %s1258_s28 }
  0x2c   :  { %1353 = vmatprep.subr.msk.mxu1 %vm77_vm1, %v73_v3  ;;  %v78_v6 = vsel %vm77_vm1, %v75_v5, 0.0  ;;  %1346 = vmatprep.subr.mxu0 %v1614_v1  ;;  %v267_v25 = vsub.s32 0, %v1742_v21  ;;  %vm290_vm6 = vcmp.lt.s32.totalorder %v1742_v21, 2  ;;  %v1763_v44 = vld [vmem:[%s1904_s4] ss:$0 sm:$0xff]  ;;  %s1583_s29 = scalar_lea.vmem %s1259_s28, 16  ;;  %p1588_p2 = scmp.lt.s32.totalorder %s1259_s28, %s1259_s28 }
  0x2d   :  { %79 = vadd.xlane.f32.xlu0 %v78_v6  ;;  %p1584_p1 = scmp.ne.s32.totalorder %s1259_s28, %s1583_s29  ;;  %s1587_s30 = scalar_lea.vmem %s1259_s28, 32 }
  0x2e   :  { %p1589_p3 = scmp.lt.s32.totalorder %s1587_s30, %s1583_s29 }
  0x2f   :  { %1354 = vmatpush3.xpose.msk.msra.mxu1 %vm77_vm1, %v73_v3  ;;  %1347 = vmatpush3.xpose.msk.msra.mxu0 %vm77_vm1, %v75_v5 }
  0x30   :  { %1369 = vmatprep.subr.mxu1 %v1614_v1  ;;  %1358 = vmatprep.subr.mxu0 %v1614_v1  ;;  %p1590_p4 = por %p1589_p3, %p1588_p2 }
  0x32   :  { %1356 = vmatmul.mubr.msk.f32.vlgmr.msra.gmra.mxu1 %vm77_vm1, %v74_v2  ;;  %1349 = vmatmul.mubr.msk.f32.vlgmr.msra.gmra.mxu0 %vm77_vm1, %v1616_v8  ;;  %p1591_p5 = pnand %p1590_p4, %p1584_p1 }
  0x33   :  { %1370 = vmatpush3.msra.mxu1 %v1695_v7  ;;  %1359 = vmatpush3.msra.mxu0 %v1695_v7 }
  0x34   :  { %1366 = vmatprep.mubr.msk.f32.mxu0 %vm1615_vm0, %v1614_v1  ;;  %1360 = vmatprep.subr.mxu0 %v1614_v1 }
  0x35   :  { %1371 = vmatprep.subr.mxu1 %v1614_v1  ;;  %1361 = vmatpush3.msra.mxu0 %v1699_v9 }
  0x36   :  { %1372 = vmatpush3.msra.mxu1 %v1699_v9  ;;  %1362 = vmatprep.subr.mxu0 %v1614_v1 }
  0x37   :  { %1373 = vmatprep.subr.mxu1 %v1614_v1  ;;  %1363 = vmatpush3.msra.mxu0 %v1706_v10 }
  0x38   :  { %1374 = vmatpush3.msra.mxu1 %v1706_v10  ;;  %1364 = vmatprep.subr.mxu0 %v1614_v1 }
  0x39   :  { %1375 = vmatprep.subr.mxu1 %v1614_v1  ;;  %1365 = vmatpush3.msra.mxu0 %v1712_v11 }
  0x3a   :  { %1376 = vmatpush3.msra.mxu1 %v1712_v11  ;;  %1367 = vmatmul.mubr.f32.vlgmr.msra.gmra.mxu0 %v1614_v1 }
  0x3b   :  { %1377 = vmatprep.mubr.msk.f32.mxu1 %vm1615_vm0, %v1614_v1  ;;  %1380 = vmatprep.subr.mxu0 %v1614_v1 }
  0x3c   :  { %1388 = vmatprep.mubr.msk.f32.mxu0 %vm1615_vm0, %v1614_v1  ;;  %1381 = vmatpush3.msra.mxu0 %v1695_v7 }
  0x3d   :  { %1391 = vmatprep.subr.mxu1 %v1614_v1  ;;  %1382 = vmatprep.subr.mxu0 %v1614_v1 }
  0x3e   :  { %1383 = vmatpush3.msra.mxu0 %v1699_v9 }
  0x3f   :  { %1384 = vmatprep.subr.mxu0 %v1614_v1 }
  0x40   :  { %1385 = vmatpush3.msra.mxu0 %v1706_v10 }
  0x41   :  { %1386 = vmatprep.subr.mxu0 %v1614_v1 }
  0x42   :  { %1387 = vmatpush3.msra.mxu0 %v1712_v11 }
  0x43   :  { %1402 = vmatprep.subr.mxu0 %v1614_v1 }
  0xb6   :  { %v80_v12 = vpop.xlane.xlu0 %79 }
  0xb7   :  { %1465 = vrsqrt.f32 %v80_v12  ;;  %vm86_vm2 = vcmp.eq.f32.partialorder %v80_v12, inf  ;;  %v89_v26 = vand.u32 2147483648, %v80_v12  ;;  %vm88_vm4 = vcmp.eq.f32.partialorder %v80_v12, 0.0 }
  0xc4   :  { %v1466_v19 = vpop.eup %1465 }
  0xc5   :  { %v85_v22 = vmul.f32 %v1466_v19, %v80_v12 }
  0xc7   :  { %v87_v28 = vsel %vm86_vm2, %v80_v12, %v85_v22 }
  0xc8   :  { %v90_v32 = vsel %vm88_vm4, %v89_v26, %v87_v28 }
  0xf2   :  { %v173_v13 = vpop.f32.mrf.mxu0  ;;  %v1751_v35 = vpop.f32.mrf.mxu1 }
  0xf3   :  { %1467 = vrsqrt.f32 %v173_v13  ;;  %vm179_vm3 = vcmp.eq.f32.partialorder %v173_v13, inf  ;;  %v182_v27 = vand.u32 2147483648, %v173_v13  ;;  %vm181_vm5 = vcmp.eq.f32.partialorder %v173_v13, 0.0 }
  0xf4   :  { %v1350_v14 = vpop.f32.mrf.mxu0  ;;  %v256_v37 = vpop.f32.mrf.mxu1 }
  0xfa   :  { %v393_v17 = vpop.f32.mrf.mxu0 }
  0xfb   :  { %v394_v18 = vadd.f32 %v1739_v15, %v393_v17 }
  0xfc   :  { %v1368_v20 = vpop.f32.mrf.mxu0 }
  0xfd   :  { %405 = vrot.lane.b32.xlu1 %v394_v18, %s1617_s22 }
 0x100   :  { %v1468_v23 = vpop.eup %1467 }
 0x101   :  { %v178_v24 = vmul.f32 %v1468_v23, %v173_v13 }
 0x103   :  { %v180_v29 = vsel %vm179_vm3, %v173_v13, %v178_v24 }
 0x104   :  { %v183_v30 = vsel %vm181_vm5, %v182_v27, %v180_v29 }
 0x105   :  { %v1748_v31 = vrot.slane %v183_v30, %v267_v25 }
 0x107   :  { %v269_v33 = vmul.f32 %v1748_v31, %v90_v32 }
 0x109   :  { %v271_v34 = vmax.f32 %v269_v33, 1e-08 }
 0x10b   :  { %1469 = vrcp.f32 %v271_v34 }
 0x118   :  { %v1470_v36 = vpop.eup %1469 }
 0x119   :  { %v274_v39 = vmul.f32 %v1470_v36, %v256_v37 }
 0x11b   :  { %v279_v40 = vadd.f32 %v277_v38, %v274_v39 }
 0x11d   :  { %v281_v41 = vsel %vm77_vm1, %v279_v40, -inf }
 0x11e   :  { %282 = vmax.xlane.f32.xlu0 %v281_v41 }
 0x16f   :  { %v406_v52 = vpop.permute.xlu1 %405 }
 0x1a7   :  { %v283_v43 = vpop.xlane.xlu0 %282 }
 0x1a8   :  { %v292_v45 = vsel %vm290_vm6, 0.0, %v283_v43 }
 0x1a9   :  { %v301_v46 = vmul.f32 %v1758_v42, %v292_v45 }
 0x1ab   :  { %v1767_v47 = vadd.f32 %v1763_v44, %v301_v46 }
 0x1ad   :  { %v397_v48 = vadd.f32 %v394_v18, %v1767_v47 }
 0x1af   :  { %v1278_v49 = vmul.f32 -1.442695, %v397_v48 }
 0x1b1   :  { %1471 = vpow2.f32 %v1278_v49 }
 0x1be   :  { %v1472_v50 = vpop.eup %1471 }
 0x1bf   :  { %v401_v51 = vadd.f32 1.0, %v1472_v50 }
 0x1c1   :  { %1473 = vrcp.f32 %v401_v51 }
 0x1ce   :  { %v1474_v53 = vpop.eup %1473 }
 0x1cf   :  { %v408_v54 = vmul.f32 %v1474_v53, %v406_v52  ;;  %v415_v58 = vsub.f32 1.0, %v1474_v53  ;;  %v421_v60 = vmul.f32 0.0, %v1474_v53 }
 0x1d1   :  { %410 = vrot.lane.b32.xlu1 %v408_v54, %s1617_s22 }
 0x243   :  { %v411_v55 = vpop.permute.xlu1 %410 }
 0x244   :  { %v413_v56 = vadd.f32 %v411_v55, %v1767_v47 }
 0x246   :  { %1475 = vtanh.f32 %v413_v56 }
 0x253   :  { %v1476_v57 = vpop.eup %1475 }
 0x254   :  { %417 = vrot.lane.b32.xlu0 %v1476_v57, %s1618_s2 }
 0x2c6   :  { %v418_v59 = vpop.permute.xlu0 %417 }
 0x2c7   :  { %v420_v61 = vmul.f32 %v418_v59, %v415_v58 }
 0x2c9   :  { %v422_v62 = vadd.f32 %v421_v60, %v420_v61 }
 0x2cb   :  { %424 = vrot.lane.b32.xlu1 %v422_v62, %s1618_s2  ;;  %v524_v22 = vrot.slane %v422_v62, 6 }
 0x33d   :  { %v425_v63 = vpop.permute.xlu1 %424 }
 0x33e   :  { %1378 = vmatmul.mubr.msk.f32.vlgmr.msra.gmra.mxu1 %vm323_vm7, %v425_v63 }
 0x33f   :  { %1392 = vmatpush3.msra.mxu1 %v1695_v7  ;;  %1399 = vmatprep.mubr.msk.f32.mxu1 %vm1615_vm0, %v1614_v1 }
 0x340   :  { %1393 = vmatprep.subr.mxu1 %v1614_v1 }
 0x341   :  { %1394 = vmatpush3.msra.mxu1 %v1699_v9 }
 0x342   :  { %1395 = vmatprep.subr.mxu1 %v1614_v1 }
 0x343   :  { %1396 = vmatpush3.msra.mxu1 %v1706_v10 }
 0x344   :  { %1397 = vmatprep.subr.mxu1 %v1614_v1 }
 0x345   :  { %1398 = vmatpush3.msra.mxu1 %v1712_v11 }
 0x346   :  { %1413 = vmatprep.subr.mxu1 %v1614_v1 }
 0x3fe   :  { %v494_v0 = vpop.f32.mrf.mxu1 }
 0x3ff   :  { %v495_v2 = vadd.f32 %v1739_v15, %v494_v0 }
 0x400   :  { %v1379_v3 = vpop.f32.mrf.mxu1 }
 0x401   :  { %v499_v5 = vrot.slane %v495_v2, 6 }
 0x403   :  { %508 = vrot.lane.b32.xlu1 %v499_v5, %s1617_s22  ;;  %v501_v6 = vadd.f32 %v499_v5, %v1767_v47 }
 0x405   :  { %v1280_v8 = vmul.f32 -1.442695, %v501_v6 }
 0x407   :  { %1477 = vpow2.f32 %v1280_v8 }
 0x414   :  { %v1478_v12 = vpop.eup %1477 }
 0x415   :  { %v505_v13 = vadd.f32 1.0, %v1478_v12 }
 0x417   :  { %1479 = vrcp.f32 %v505_v13 }
 0x424   :  { %v1480_v14 = vpop.eup %1479 }
 0x425   :  { %v518_v23 = vsub.f32 1.0, %v1480_v14  ;;  %v526_v27 = vmul.f32 %v1480_v14, %v524_v22 }
 0x475   :  { %v509_v16 = vpop.permute.xlu1 %508 }
 0x476   :  { %v511_v17 = vmul.f32 %v1480_v14, %v509_v16  ;;  %v81_v14 = vsel %vm77_vm1, %v1681_v4, 0.0 }
 0x478   :  { %513 = vrot.lane.b32.xlu1 %v511_v17, %s1617_s22 }
 0x4ea   :  { %v514_v18 = vpop.permute.xlu1 %513 }
 0x4eb   :  { %v516_v19 = vadd.f32 %v514_v18, %v1767_v47 }
 0x4ed   :  { %1481 = vtanh.f32 %v516_v19 }
 0x4fa   :  { %v1482_v20 = vpop.eup %1481 }
 0x4fb   :  { %520 = vrot.lane.b32.xlu1 %v1482_v20, %s1618_s2 }
 0x56d   :  { %v521_v24 = vpop.permute.xlu1 %520 }
 0x56e   :  { %v523_v26 = vmul.f32 %v521_v24, %v518_v23 }
 0x570   :  { %v527_v28 = vadd.f32 %v526_v27, %v523_v26 }
 0x572   :  { %v529_v29 = vrot.slane %v527_v28, 2  ;;  %v630_v50 = vrot.slane %v527_v28, 6 }
 0x574   :  { %530 = vrot.lane.b32.xlu1 %v529_v29, %s1618_s2 }
 0x5e6   :  { %v531_v30 = vpop.permute.xlu1 %530 }
 0x5e7   :  { %1389 = vmatmul.mubr.msk.f32.vlgmr.msra.gmra.mxu0 %vm323_vm7, %v531_v30 }
 0x5e8   :  { %1403 = vmatpush3.msra.mxu0 %v1695_v7  ;;  %1410 = vmatprep.mubr.msk.f32.mxu0 %vm1615_vm0, %v1614_v1 }
 0x5e9   :  { %1404 = vmatprep.subr.mxu0 %v1614_v1 }
 0x5ea   :  { %1405 = vmatpush3.msra.mxu0 %v1699_v9 }
 0x5eb   :  { %1406 = vmatprep.subr.mxu0 %v1614_v1 }
 0x5ec   :  { %1407 = vmatpush3.msra.mxu0 %v1706_v10 }
 0x5ed   :  { %1408 = vmatprep.subr.mxu0 %v1614_v1 }
 0x5ee   :  { %1409 = vmatpush3.msra.mxu0 %v1712_v11 }
 0x5ef   :  { %1424 = vmatprep.subr.mxu0 %v1614_v1 }
 0x6a7   :  { %v600_v32 = vpop.f32.mrf.mxu0 }
 0x6a8   :  { %v601_v33 = vadd.f32 %v1739_v15, %v600_v32 }
 0x6a9   :  { %v1390_v34 = vpop.f32.mrf.mxu0 }
 0x6aa   :  { %v605_v36 = vrot.slane %v601_v33, 4  ;;  %v278_v33 = vld [vmem:[#allocation6 + $0x8] sm:$0xff] }
 0x6ac   :  { %614 = vrot.lane.b32.xlu1 %v605_v36, %s1617_s22  ;;  %v607_v37 = vadd.f32 %v605_v36, %v1767_v47 }
 0x6ae   :  { %v1282_v38 = vmul.f32 -1.442695, %v607_v37 }
 0x6b0   :  { %1483 = vpow2.f32 %v1282_v38 }
 0x6bd   :  { %v1484_v39 = vpop.eup %1483 }
 0x6be   :  { %v611_v40 = vadd.f32 1.0, %v1484_v39 }
 0x6c0   :  { %1485 = vrcp.f32 %v611_v40 }
 0x6cd   :  { %v1486_v41 = vpop.eup %1485 }
 0x6ce   :  { %v624_v51 = vsub.f32 1.0, %v1486_v41  ;;  %v632_v53 = vmul.f32 %v1486_v41, %v630_v50 }
 0x71e   :  { %v615_v43 = vpop.permute.xlu1 %614 }
 0x71f   :  { %v617_v45 = vmul.f32 %v1486_v41, %v615_v43 }
 0x721   :  { %619 = vrot.lane.b32.xlu0 %v617_v45, %s1617_s22 }
 0x793   :  { %v620_v46 = vpop.permute.xlu0 %619 }
 0x794   :  { %v622_v48 = vadd.f32 %v620_v46, %v1767_v47 }
 0x796   :  { %1487 = vtanh.f32 %v622_v48 }
 0x7a3   :  { %v1488_v49 = vpop.eup %1487 }
 0x7a4   :  { %626 = vrot.lane.b32.xlu1 %v1488_v49, %s1618_s2 }
 0x816   :  { %v627_v52 = vpop.permute.xlu1 %626 }
 0x817   :  { %v629_v54 = vmul.f32 %v627_v52, %v624_v51 }
 0x819   :  { %v633_v55 = vadd.f32 %v632_v53, %v629_v54 }
 0x81b   :  { %v635_v56 = vrot.slane %v633_v55, 4  ;;  %v736_v16 = vrot.slane %v633_v55, 6 }
 0x81d   :  { %636 = vrot.lane.b32.xlu0 %v635_v56, %s1618_s2 }
 0x88f   :  { %v637_v57 = vpop.permute.xlu0 %636 }
 0x890   :  { %1400 = vmatmul.mubr.msk.f32.vlgmr.msra.gmra.mxu1 %vm323_vm7, %v637_v57 }
 0x891   :  { %1414 = vmatpush3.msra.mxu1 %v1695_v7  ;;  %1421 = vmatprep.mubr.msk.f32.mxu1 %vm1615_vm0, %v1614_v1 }
 0x892   :  { %1415 = vmatprep.subr.mxu1 %v1614_v1 }
 0x893   :  { %1416 = vmatpush3.msra.mxu1 %v1699_v9 }
 0x894   :  { %1417 = vmatprep.subr.mxu1 %v1614_v1 }
 0x895   :  { %1418 = vmatpush3.msra.mxu1 %v1706_v10 }
 0x896   :  { %1419 = vmatprep.subr.mxu1 %v1614_v1 }
 0x897   :  { %1420 = vmatpush3.msra.mxu1 %v1712_v11 }
 0x898   :  { %1435 = vmatprep.subr.mxu1 %v1614_v1 }
 0x950   :  { %v706_v58 = vpop.f32.mrf.mxu1 }
 0x951   :  { %v707_v59 = vadd.f32 %v1739_v15, %v706_v58 }
 0x952   :  { %v1401_v60 = vpop.f32.mrf.mxu1 }
 0x953   :  { %v711_v61 = vrot.slane %v707_v59, 2 }
 0x955   :  { %720 = vrot.lane.b32.xlu1 %v711_v61, %s1617_s22  ;;  %v713_v62 = vadd.f32 %v711_v61, %v1767_v47 }
 0x957   :  { %v1284_v63 = vmul.f32 -1.442695, %v713_v62 }
 0x959   :  { %1489 = vpow2.f32 %v1284_v63 }
 0x966   :  { %v1490_v0 = vpop.eup %1489 }
 0x967   :  { %v717_v2 = vadd.f32 1.0, %v1490_v0 }
 0x969   :  { %1491 = vrcp.f32 %v717_v2 }
 0x976   :  { %v1492_v3 = vpop.eup %1491 }
 0x977   :  { %v730_v17 = vsub.f32 1.0, %v1492_v3  ;;  %v738_v19 = vmul.f32 %v1492_v3, %v736_v16 }
 0x9c7   :  { %v721_v5 = vpop.permute.xlu1 %720 }
 0x9c8   :  { %v723_v6 = vmul.f32 %v1492_v3, %v721_v5 }
 0x9ca   :  { %725 = vrot.lane.b32.xlu0 %v723_v6, %s1617_s22 }
 0xa3c   :  { %v726_v8 = vpop.permute.xlu0 %725 }
 0xa3d   :  { %v728_v12 = vadd.f32 %v726_v8, %v1767_v47 }
 0xa3f   :  { %1493 = vtanh.f32 %v728_v12 }
 0xa4c   :  { %v1494_v13 = vpop.eup %1493 }
 0xa4d   :  { %732 = vrot.lane.b32.xlu1 %v1494_v13, %s1618_s2 }
 0xa71   :  { %82 = vadd.xlane.f32.xlu1 %v81_v14 }
 0xabf   :  { %v733_v18 = vpop.permute.xlu1 %732 }
 0xac0   :  { %v735_v20 = vmul.f32 %v733_v18, %v730_v17 }
 0xac2   :  { %v739_v22 = vadd.f32 %v738_v19, %v735_v20 }
 0xac4   :  { %v741_v23 = vrot.slane %v739_v22, 6 }
 0xac6   :  { %742 = vrot.lane.b32.xlu0 %v741_v23, %s1618_s2 }
 0xafa   :  { %v83_v24 = vpop.xlane.xlu1 %82 }
 0xafb   :  { %1495 = vrsqrt.f32 %v83_v24  ;;  %vm93_vm8 = vcmp.eq.f32.partialorder %v83_v24, inf  ;;  %v96_v26 = vand.u32 2147483648, %v83_v24  ;;  %vm95_vm9 = vcmp.eq.f32.partialorder %v83_v24, 0.0 }
 0xb08   :  { %v1496_v47 = vpop.eup %1495 }
 0xb09   :  { %v92_v27 = vmul.f32 %v1496_v47, %v83_v24 }
 0xb0b   :  { %v94_v28 = vsel %vm93_vm8, %v83_v24, %v92_v27 }
 0xb0c   :  { %v97_v29 = vsel %vm95_vm9, %v96_v26, %v94_v28 }
 0xb0d   :  { %v270_v4 = vmul.f32 %v1748_v31, %v97_v29 }
 0xb0f   :  { %v272_v30 = vmax.f32 %v270_v4, 1e-08 }
 0xb11   :  { %1497 = vrcp.f32 %v272_v30 }
 0xb1e   :  { %v1498_v32 = vpop.eup %1497 }
 0xb1f   :  { %v276_v34 = vmul.f32 %v1498_v32, %v1751_v35 }
 0xb21   :  { %v280_v36 = vadd.f32 %v278_v33, %v276_v34 }
 0xb23   :  { %v284_v37 = vsel %vm77_vm1, %v280_v36, -inf }
 0xb24   :  { %285 = vmax.xlane.f32.xlu0 %v284_v37 }
 0xb38   :  { %v743_v38 = vpop.permute.xlu0 %742 }
 0xb39   :  { %1411 = vmatmul.mubr.msk.f32.vlgmr.msra.gmra.mxu0 %vm323_vm7, %v743_v38 }
 0xb3a   :  { %1425 = vmatpush3.msra.mxu0 %v1695_v7  ;;  %1432 = vmatprep.mubr.msk.f32.mxu0 %vm1615_vm0, %v1614_v1 }
 0xb3b   :  { %1426 = vmatprep.subr.mxu0 %v1614_v1 }
 0xb3c   :  { %1427 = vmatpush3.msra.mxu0 %v1699_v9 }
 0xb3d   :  { %1428 = vmatprep.subr.mxu0 %v1614_v1 }
 0xb3e   :  { %1429 = vmatpush3.msra.mxu0 %v1706_v10 }
 0xb3f   :  { %1430 = vmatprep.subr.mxu0 %v1614_v1 }
 0xb40   :  { %1431 = vmatpush3.msra.mxu0 %v1712_v11 }
 0xb41   :  { %1446 = vmatprep.subr.mxu0 %v1614_v1 }
 0xbad   :  { %v286_v40 = vpop.xlane.xlu0 %285 }
 0xbae   :  { %v302_v41 = vmul.f32 %v1758_v42, %v286_v40 }
 0xbb0   :  { %v1848_v43 = vadd.f32 %v1763_v44, %v302_v41 }
 0xbf9   :  { %v812_v31 = vpop.f32.mrf.mxu0 }
 0xbfa   :  { %v813_v35 = vadd.f32 %v1739_v15, %v812_v31 }
 0xbfb   :  { %v1412_v39 = vpop.f32.mrf.mxu0 }
 0xbfc   :  { %824 = vrot.lane.b32.xlu0 %v813_v35, %s1617_s22  ;;  %v816_v45 = vadd.f32 %v813_v35, %v1848_v43 }
 0xbfe   :  { %v1286_v46 = vmul.f32 -1.442695, %v816_v45 }
 0xc00   :  { %1499 = vpow2.f32 %v1286_v46 }
 0xc0d   :  { %v1500_v48 = vpop.eup %1499 }
 0xc0e   :  { %v820_v49 = vadd.f32 1.0, %v1500_v48 }
 0xc10   :  { %1501 = vrcp.f32 %v820_v49 }
 0xc1d   :  { %v1502_v50 = vpop.eup %1501 }
 0xc1e   :  { %v834_v44 = vsub.f32 1.0, %v1502_v50  ;;  %v841_v56 = vmul.f32 %v1502_v50, %v741_v23 }
 0xc6e   :  { %v825_v51 = vpop.permute.xlu0 %824 }
 0xc6f   :  { %v827_v52 = vmul.f32 %v1502_v50, %v825_v51 }
 0xc71   :  { %829 = vrot.lane.b32.xlu1 %v827_v52, %s1617_s22 }
 0xce3   :  { %v830_v53 = vpop.permute.xlu1 %829 }
 0xce4   :  { %v832_v54 = vadd.f32 %v830_v53, %v1848_v43 }
 0xce6   :  { %1503 = vtanh.f32 %v832_v54 }
 0xcf3   :  { %v1504_v42 = vpop.eup %1503 }
 0xcf4   :  { %836 = vrot.lane.b32.xlu1 %v1504_v42, %s1618_s2 }
 0xd66   :  { %v837_v55 = vpop.permute.xlu1 %836 }
 0xd67   :  { %v839_v57 = vmul.f32 %v837_v55, %v834_v44 }
 0xd69   :  { %v842_v58 = vadd.f32 %v841_v56, %v839_v57  ;;  %v1161_v57 = vld [vmem:[#allocation2] sm:$0x1] }
 0xd6b   :  { %844 = vrot.lane.b32.xlu0 %v842_v58, %s1618_s2  ;;  %v944_v12 = vrot.slane %v842_v58, 6  ;;  %v1619_v58 = vmov 0  }
 0xd6c   :  { %1463 = vset.pattern.permute.xlu1 %v1619_v58  ;;  %1464 = vset.pattern.permute.xlu0 %v1619_v58 }
 0xddd   :  { %v845_v59 = vpop.permute.xlu0 %844 }
 0xdde   :  { %1422 = vmatmul.mubr.msk.f32.vlgmr.msra.gmra.mxu1 %vm323_vm7, %v845_v59 }
 0xddf   :  { %1436 = vmatpush3.msra.mxu1 %v1695_v7  ;;  %1443 = vmatprep.mubr.msk.f32.mxu1 %vm1615_vm0, %v1614_v1 }
 0xde0   :  { %1437 = vmatprep.subr.mxu1 %v1614_v1 }
 0xde1   :  { %1438 = vmatpush3.msra.mxu1 %v1699_v9 }
 0xde2   :  { %1439 = vmatprep.subr.mxu1 %v1614_v1 }
 0xde3   :  { %1440 = vmatpush3.msra.mxu1 %v1706_v10 }
 0xde4   :  { %1441 = vmatprep.subr.mxu1 %v1614_v1 }
 0xde5   :  { %1442 = vmatpush3.msra.mxu1 %v1712_v11 }
 0xe9e   :  { %v914_v60 = vpop.f32.mrf.mxu1 }
 0xe9f   :  { %v915_v61 = vadd.f32 %v1739_v15, %v914_v60 }
 0xea0   :  { %v1423_v62 = vpop.f32.mrf.mxu1 }
 0xea1   :  { %v919_v7 = vrot.slane %v915_v61, 6 }
 0xea3   :  { %928 = vrot.lane.b32.xlu1 %v919_v7, %s1617_s22  ;;  %v921_v63 = vadd.f32 %v919_v7, %v1848_v43 }
 0xea5   :  { %v1288_v0 = vmul.f32 -1.442695, %v921_v63 }
 0xea7   :  { %1505 = vpow2.f32 %v1288_v0 }
 0xeb4   :  { %v1506_v9 = vpop.eup %1505 }
 0xeb5   :  { %v925_v2 = vadd.f32 1.0, %v1506_v9 }
 0xeb7   :  { %1507 = vrcp.f32 %v925_v2 }
 0xec4   :  { %v1508_v3 = vpop.eup %1507 }
 0xec5   :  { %v938_v13 = vsub.f32 1.0, %v1508_v3  ;;  %v946_v17 = vmul.f32 %v1508_v3, %v944_v12 }
 0xf15   :  { %v929_v10 = vpop.permute.xlu1 %928 }
 0xf16   :  { %v931_v5 = vmul.f32 %v1508_v3, %v929_v10 }
 0xf18   :  { %933 = vrot.lane.b32.xlu0 %v931_v5, %s1617_s22 }
 0xf8a   :  { %v934_v11 = vpop.permute.xlu0 %933 }
 0xf8b   :  { %v936_v6 = vadd.f32 %v934_v11, %v1848_v43 }
 0xf8d   :  { %1509 = vtanh.f32 %v936_v6 }
 0xf9a   :  { %v1510_v8 = vpop.eup %1509 }
 0xf9b   :  { %940 = vrot.lane.b32.xlu1 %v1510_v8, %s1618_s2 }
0x100d   :  { %v941_v14 = vpop.permute.xlu1 %940 }
0x100e   :  { %v943_v16 = vmul.f32 %v941_v14, %v938_v13 }
0x1010   :  { %v947_v18 = vadd.f32 %v946_v17, %v943_v16 }
0x1012   :  { %v949_v19 = vrot.slane %v947_v18, 2  ;;  %v1050_v36 = vrot.slane %v947_v18, 6 }
0x1014   :  { %950 = vrot.lane.b32.xlu0 %v949_v19, %s1618_s2 }
0x1086   :  { %v951_v20 = vpop.permute.xlu0 %950 }
0x1087   :  { %1433 = vmatmul.mubr.msk.f32.vlgmr.msra.gmra.mxu0 %vm323_vm7, %v951_v20 }
0x1088   :  { %1448 = vmatprep.mubr.msk.f32.mxu0 %vm1615_vm0, %v1614_v1 }
0x1147   :  { %v1020_v22 = vpop.f32.mrf.mxu0 }
0x1148   :  { %v1021_v23 = vadd.f32 %v1739_v15, %v1020_v22 }
0x1149   :  { %v1434_v24 = vpop.f32.mrf.mxu0 }
0x114a   :  { %v1025_v47 = vrot.slane %v1021_v23, 4 }
0x114c   :  { %1034 = vrot.lane.b32.xlu1 %v1025_v47, %s1617_s22  ;;  %v1027_v26 = vadd.f32 %v1025_v47, %v1848_v43 }
0x114e   :  { %v1290_v27 = vmul.f32 -1.442695, %v1027_v26 }
0x1150   :  { %1511 = vpow2.f32 %v1290_v27 }
0x115d   :  { %v1512_v28 = vpop.eup %1511 }
0x115e   :  { %v1031_v29 = vadd.f32 1.0, %v1512_v28 }
0x1160   :  { %1513 = vrcp.f32 %v1031_v29 }
0x116d   :  { %v1514_v4 = vpop.eup %1513 }
0x116e   :  { %v1044_v37 = vsub.f32 1.0, %v1514_v4  ;;  %v1052_v31 = vmul.f32 %v1514_v4, %v1050_v36 }
0x11be   :  { %v1035_v30 = vpop.permute.xlu1 %1034 }
0x11bf   :  { %v1037_v32 = vmul.f32 %v1514_v4, %v1035_v30 }
0x11c1   :  { %1039 = vrot.lane.b32.xlu0 %v1037_v32, %s1617_s22 }
0x1233   :  { %v1040_v1 = vpop.permute.xlu0 %1039 }
0x1234   :  { %v1042_v33 = vadd.f32 %v1040_v1, %v1848_v43 }
0x1236   :  { %1515 = vtanh.f32 %v1042_v33 }
0x1243   :  { %v1516_v34 = vpop.eup %1515 }
0x1244   :  { %1046 = vrot.lane.b32.xlu1 %v1516_v34, %s1618_s2 }
0x12b6   :  { %v1047_v38 = vpop.permute.xlu1 %1046 }
0x12b7   :  { %v1049_v35 = vmul.f32 %v1047_v38, %v1044_v37 }
0x12b9   :  { %v1053_v39 = vadd.f32 %v1052_v31, %v1049_v35 }
0x12bb   :  { %v1055_v40 = vrot.slane %v1053_v39, 4  ;;  %v1156_v59 = vrot.slane %v1053_v39, 6 }
0x12bd   :  { %1056 = vrot.lane.b32.xlu0 %v1055_v40, %s1618_s2 }
0x132f   :  { %v1057_v41 = vpop.permute.xlu0 %1056 }
0x1330   :  { %1444 = vmatmul.mubr.msk.f32.vlgmr.msra.gmra.mxu1 %vm323_vm7, %v1057_v41 }
0x13f0   :  { %v1126_v45 = vpop.f32.mrf.mxu1 }
0x13f1   :  { %v1127_v46 = vadd.f32 %v1739_v15, %v1126_v45 }
0x13f2   :  { %v1445_v48 = vpop.f32.mrf.mxu1 }
0x13f3   :  { %v1131_v49 = vrot.slane %v1127_v46, 2 }
0x13f5   :  { %1140 = vrot.lane.b32.xlu1 %v1131_v49, %s1617_s22  ;;  %v1133_v50 = vadd.f32 %v1131_v49, %v1848_v43 }
0x13f7   :  { %v1292_v51 = vmul.f32 -1.442695, %v1133_v50 }
0x13f9   :  { %1517 = vpow2.f32 %v1292_v51 }
0x1406   :  { %v1518_v52 = vpop.eup %1517 }
0x1407   :  { %v1137_v53 = vadd.f32 1.0, %v1518_v52 }
0x1409   :  { %1519 = vrcp.f32 %v1137_v53 }
0x1416   :  { %v1520_v54 = vpop.eup %1519 }
0x1417   :  { %v1150_v60 = vsub.f32 1.0, %v1520_v54  ;;  %v1158_v62 = vmul.f32 %v1520_v54, %v1156_v59 }
0x1467   :  { %v1141_v42 = vpop.permute.xlu1 %1140 }
0x1468   :  { %v1143_v44 = vmul.f32 %v1520_v54, %v1141_v42 }
0x146a   :  { %1145 = vrot.lane.b32.xlu0 %v1143_v44, %s1617_s22 }
0x14dc   :  { %v1146_v55 = vpop.permute.xlu0 %1145 }
0x14dd   :  { %v1148_v56 = vadd.f32 %v1146_v55, %v1848_v43  ;;  %v1160_v43 = vld [vmem:[%s1906_s6] sm:$0x1] }
0x14df   :  { %1521 = vtanh.f32 %v1148_v56 }
0x14ec   :  { %v1522_v15 = vpop.eup %1521 }
0x14ed   :  { %1152 = vrot.lane.b32.xlu1 %v1522_v15, %s1618_s2 }
0x14f1   :  { %1164 = vperm.xlu1 %1463, %v1161_v57  }
0x155f   :  { %v1153_v61 = vpop.permute.xlu1 %1152 }
0x1560   :  { %v1155_v7 = vmul.f32 %v1153_v61, %v1150_v60 }
0x1562   :  { %v1159_v63 = vadd.f32 %v1158_v62, %v1155_v7 }
0x1564   :  { %v1172_v0 = vrot.slane %v1159_v63, 6 }
0x1566   :  { %1173 = vrot.lane.b32.xlu0 %v1172_v0, %s1618_s2 }
0x156c   :  { %v1165_v2 = vpop.permute.xlu1 %1164 }
0x156d   :  { %v1170_v3 = vrot.slane %v1165_v2, %v267_v25 }
0x15d8   :  { %v1174_v9 = vpop.permute.xlu0 %1173 }
0x15d9   :  { %1447 = vmatpush3.xpose.msk.msra.mxu0 %vm323_vm7, %v1174_v9 }
0x15dc   :  { %1449 = vmatmul.mubr.msk.f32.vlgmr.msra.gmra.mxu0 %vm323_vm7, %v1160_v43 }
0x169c   :  { %v1246_v10 = vpop.f32.mrf.mxu0 }
0x169d   :  { %v1247_v5 = vadd.f32 %v1246_v10, %v1170_v3 }
0x169e   :  { %v1450_v11 = vpop.f32.mrf.mxu0 }
0x169f   :  { %1251 = vst.msk [vmem:[#allocation9] sm:$0x1] %vm1250_vm10, %v1247_v5 }
0x16a0   :  { %1594 = shalt.err (!%p1591_p5)
}
0x16a1   :  { %1261 = dma.vmem_to_hbm [thread:$0]  %s1259_s28, 16, %s1908_s8, [#allocation5]  }
0x16a2   :  { %1607 = dma.done.wait [#allocation5], 16  }
0x16a3   :  { %1608 = vsyncadd [#allocation5], 4294967280 }
0x16a4   :  { %1265 = vsyncpa [#allocation4], 1 }
0x16a5   :  { %1266 = vsyncpa [#allocation7], 1 }
0x16a6   :  { %1267 = vsyncpa [#allocation5], 1 }

</bundles_post_ra>
